<compile_context>
chip_gen: v6e
topology: v6e:2x2x1
jax: 0.10.0
libtpu: 0.0.40
codegen_flags: <defaults>
</compile_context>

<pallas_src>
import functools

import jax
import jax.numpy as jnp
from jax import lax
from jax.experimental import pallas as pl
from jax.experimental.pallas import tpu as pltpu

NUM_CLASSES = 10      # config['model']['num_classes'] (synthetic)
DROP_RATE = 0.5       # config['model']['drop_rate']   (synthetic)
BN_EPS = 1e-5

# ResNet-50 stage config: (bottleneck width, num blocks, stride of first block)
STAGE_CFG = [(64, 3, 1), (128, 4, 2), (256, 6, 2), (512, 3, 2)]
EXPANSION = 4

MAX_TK = 2048                      # cap on the GEMM K tile
VMEM_LIMIT = 32 * 1024 * 1024      # explicit scoped-VMEM budget (fits v5e/v6e/v7x)


def _round_up(x, m):
    return (x + m - 1) // m * m


# ----------------------------------------------------------------------------
# Pallas kernels
# ----------------------------------------------------------------------------
def _mm_kernel_multi(*refs, apply_relu, has_res):
    """Tiled bf16 GEMM, K split over the last grid axis (f32 VMEM accumulator)."""
    if has_res:
        a_ref, b_ref, bias_ref, res_ref, o_ref, acc_ref = refs
    else:
        a_ref, b_ref, bias_ref, o_ref, acc_ref = refs
        res_ref = None

    k = pl.program_id(2)

    @pl.when(k == 0)
    def _init():
        acc_ref[...] = jnp.zeros_like(acc_ref)

    acc_ref[...] += jnp.dot(a_ref[...], b_ref[...],
                            preferred_element_type=jnp.float32)

    @pl.when(k == pl.num_programs(2) - 1)
    def _finalize():
        r = acc_ref[...] + bias_ref[...]
        if res_ref is not None:
            r = r + res_ref[...].astype(jnp.float32)
        if apply_relu:
            r = jnp.maximum(r, 0.0)
        o_ref[...] = r.astype(o_ref.dtype)


def _mm_kernel_single(*refs, apply_relu, has_res):
    """Single-K GEMM fast path: no VMEM scratch round-trip."""
    if has_res:
        a_ref, b_ref, bias_ref, res_ref, o_ref = refs
    else:
        a_ref, b_ref, bias_ref, o_ref = refs
        res_ref = None
    r = jnp.dot(a_ref[...], b_ref[...],
                preferred_element_type=jnp.float32) + bias_ref[...]
    if res_ref is not None:
        r = r + res_ref[...].astype(jnp.float32)
    if apply_relu:
        r = jnp.maximum(r, 0.0)
    o_ref[...] = r.astype(o_ref.dtype)


def _conv3x3_kernel(x_ref, w_ref, b_ref, o_ref, *, H, W, apply_relu):
    """Direct 3x3 / stride-1 / pad-1 conv for one image (no im2col).

    x_ref block: (1, H*W + 2*(W+1), C)  -- image flattened row-major, zero-padded by
    W+1 rows front/back.  Tap (dy, dx) contributes x_flat[r + (dy-1)*W + (dx-1)] to
    output row r; horizontal out-of-range taps are masked via the output column id.
    """
    HW = H * W
    base = W + 1
    tn = o_ref.shape[-1]

    col = lax.broadcasted_iota(jnp.int32, (HW, 1), 0) % W
    not_left = col > 0            # valid when dx == 0  (needs w-1 >= 0)
    not_right = col < (W - 1)     # valid when dx == 2  (needs w+1 <  W)

    acc = jnp.zeros((HW, tn), jnp.float32)
    for t in range(9):
        dy, dx = divmod(t, 3)
        shift = (dy - 1) * W + (dx - 1)
        xs = x_ref[0, pl.ds(base + shift, HW), :]
        if dx == 0:
            xs = jnp.where(not_left, xs, jnp.zeros_like(xs))
        elif dx == 2:
            xs = jnp.where(not_right, xs, jnp.zeros_like(xs))
        acc = acc + jnp.dot(xs, w_ref[t], preferred_element_type=jnp.float32)

    r = acc + b_ref[...]
    if apply_relu:
        r = jnp.maximum(r, 0.0)
    o_ref[0, :, :] = r.astype(o_ref.dtype)


def _maxpool_kernel(ee_ref, eo_ref, oe_ref, oo_ref, o_ref):
    """MaxPool2d(3, stride=2, pad=1) per image, from 4 parity-split views."""
    _, ho, wo, _ = o_ref.shape
    m = ee_ref[0, 0:ho, 0:wo, :]                                   # (2i  , 2j  )
    m = jnp.maximum(m, eo_ref[0, 0:ho, 0:wo, :])                   # (2i  , 2j+1)
    m = jnp.maximum(m, ee_ref[0, 0:ho, 1:wo + 1, :])               # (2i  , 2j+2)
    m = jnp.maximum(m, oe_ref[0, 0:ho, 0:wo, :])                   # (2i+1, 2j  )
    m = jnp.maximum(m, oo_ref[0, 0:ho, 0:wo, :])                   # (2i+1, 2j+1)
    m = jnp.maximum(m, oe_ref[0, 0:ho, 1:wo + 1, :])               # (2i+1, 2j+2)
    m = jnp.maximum(m, ee_ref[0, 1:ho + 1, 0:wo, :])               # (2i+2, 2j  )
    m = jnp.maximum(m, eo_ref[0, 1:ho + 1, 0:wo, :])               # (2i+2, 2j+1)
    m = jnp.maximum(m, ee_ref[0, 1:ho + 1, 1:wo + 1, :])           # (2i+2, 2j+2)
    o_ref[0, :, :, :] = m


def _gap_fc_kernel(x_ref, w_ref, b_ref, o_ref):
    """Fused global-avg-pool + final FC.  x: (Mp, H*W, C) bf16 -> o: (Mp, Np) f32."""
    x = x_ref[...].astype(jnp.float32)
    feat = jnp.mean(x, axis=1).astype(jnp.bfloat16)          # (Mp, C)
    o_ref[...] = (jnp.dot(feat, w_ref[...], preferred_element_type=jnp.float32)
                  + b_ref[...])


# ----------------------------------------------------------------------------
# Pallas wrappers
# ----------------------------------------------------------------------------
def _matmul_pallas(a, b, bias, residual, apply_relu, out_dtype):
    """out = relu?( a @ b + bias (+ residual) ), b pre-padded bf16 (Kp, Np)."""
    M, K = a.shape
    Kp, Np = b.shape

    # --- tile selection ----------------------------------------------------
    Mp = _round_up(M, 16)                      # bf16 sublane packing (16 rows)
    if Mp >= 256:
        tm = 256
        Mp = _round_up(Mp, tm)
    else:
        tm = Mp
    tn = 256 if (Np % 256 == 0) else 128
    # >=2 parallel (i,j) blocks where cheap (keeps both v7x TensorCores busy)
    if (Mp // tm) * (Np // tn) == 1 and Mp >= 64:
        tm = Mp // 2
    if Kp <= MAX_TK:
        tk = Kp
    else:
        tk = max(d for d in range(128, MAX_TK + 1, 128) if Kp % d == 0)
    # >=2 total grid steps so the BlockSpec pipeline can overlap DMAs with compute
    if (Mp // tm) * (Np // tn) == 1 and Kp // tk == 1 and Kp > 128:
        tk = max(d for d in range(128, Kp // 2 + 1, 128) if Kp % d == 0)
    nk = Kp // tk

    # --- operands (bf16; pad only if actually needed) ----------------------
    a = a.astype(jnp.bfloat16)
    if (Mp, Kp) != (M, K):
        a = jnp.pad(a, ((0, Mp - M), (0, Kp - K)))

    inputs = [a, b.astype(jnp.bfloat16), bias.astype(jnp.float32)]
    in_specs = [
        pl.BlockSpec((tm, tk), lambda i, j, k: (i, k)),
        pl.BlockSpec((tk, tn), lambda i, j, k: (k, j)),
        pl.BlockSpec((1, tn), lambda i, j, k: (0, j)),
    ]
    has_res = residual is not None
    if has_res:
        r = residual.astype(jnp.bfloat16)
        if r.shape != (Mp, Np):
            r = jnp.pad(r, ((0, Mp - r.shape[0]), (0, Np - r.shape[1])))
        inputs.append(r)
        in_specs.append(pl.BlockSpec((tm, tn), lambda i, j, k: (i, j)))

    if nk == 1:
        kernel = functools.partial(_mm_kernel_single,
                                   apply_relu=apply_relu, has_res=has_res)
        scratch = []
    else:
        kernel = functools.partial(_mm_kernel_multi,
                                   apply_relu=apply_relu, has_res=has_res)
        scratch = [pltpu.VMEM((tm, tn), jnp.float32)]

    out = pl.pallas_call(
        kernel,
        out_shape=jax.ShapeDtypeStruct((Mp, Np), out_dtype),
        grid_spec=pltpu.PrefetchScalarGridSpec(
            num_scalar_prefetch=0,
            grid=(Mp // tm, Np // tn, nk),
            in_specs=in_specs,
            out_specs=pl.BlockSpec((tm, tn), lambda i, j, k: (i, j)),
            scratch_shapes=scratch,
        ),
        compiler_params=pltpu.CompilerParams(
            dimension_semantics=("parallel", "parallel", "arbitrary"),
            vmem_limit_bytes=VMEM_LIMIT),
    )(*inputs)
    if Mp != M:
        out = out[:M]
    return out            # (M, Np) -- channel padding is kept (lane-dense)


def _conv3x3_direct(x, w3, bias, apply_relu):
    """Direct 3x3/stride-1/pad-1 conv.  x: (N,H,W,C) bf16, w3: (9, C, Np) bf16."""
    N, H, W, C = x.shape
    HW = H * W
    L = HW + 2 * (W + 1)
    T, Cp, Np = w3.shape
    assert T == 9 and Cp == C
    tn = 256 if (Np % 256 == 0) else 128

    xp = jnp.pad(x.reshape(N, HW, C), ((0, 0), (W + 1, W + 1), (0, 0)))
    kernel = functools.partial(_conv3x3_kernel, H=H, W=W, apply_relu=apply_relu)
    out = pl.pallas_call(
        kernel,
        out_shape=jax.ShapeDtypeStruct((N, HW, Np), jnp.bfloat16),
        grid_spec=pltpu.PrefetchScalarGridSpec(
            num_scalar_prefetch=0,
            grid=(N, Np // tn),
            in_specs=[
                pl.BlockSpec((1, L, Cp), lambda n, j: (n, 0, 0)),
                pl.BlockSpec((9, Cp, tn), lambda n, j: (0, 0, j)),
                pl.BlockSpec((1, tn), lambda n, j: (0, j)),
            ],
            out_specs=pl.BlockSpec((1, HW, tn), lambda n, j: (n, 0, j)),
        ),
        compiler_params=pltpu.CompilerParams(
            dimension_semantics=("parallel", "parallel"),
            vmem_limit_bytes=VMEM_LIMIT),
    )(xp, w3, bias.astype(jnp.float32))
    return out.reshape(N, H, W, Np)


def _im2col(x, kh, kw, stride, pad):
    """x: NHWC (bf16) -> (N*Ho*Wo, kh*kw*C) patches, tap ordering (dy, dx, C)."""
    N, H, W, C = x.shape
    if pad > 0:
        x = jnp.pad(x, ((0, 0), (pad, pad), (pad, pad), (0, 0)))
    Hp, Wp = H + 2 * pad, W + 2 * pad
    Ho = (Hp - kh) // stride + 1
    Wo = (Wp - kw) // stride + 1
    cols = []
    for dy in range(kh):
        for dx in range(kw):
            cols.append(x[:, dy:dy + stride * (Ho - 1) + 1:stride,
                          dx:dx + stride * (Wo - 1) + 1:stride, :])
    patches = jnp.concatenate(cols, axis=-1)
    return patches.reshape(N * Ho * Wo, kh * kw * C), Ho, Wo


def conv_bn(x, w, bias, residual=None, *, kh, kw, stride, pad, relu):
    """Conv2d (no bias) + BatchNorm (eval, folded) [+ residual] [+ ReLU].

    Output keeps the zero-padded channel dimension (lane-dense, multiple of 128).
    """
    N, H, W, C = x.shape
    x = x.astype(jnp.bfloat16)
    coutp = w.shape[-1]

    if kh == 1 and kw == 1:
        if stride > 1:
            x = x[:, ::stride, ::stride, :]
        Ho, Wo = x.shape[1], x.shape[2]
        patches = x.reshape(N * Ho * Wo, x.shape[3])
        wk = w.reshape(-1, coutp)
        res2d = (residual.reshape(N * Ho * Wo, coutp)
                 if residual is not None else None)
        y = _matmul_pallas(patches, wk, bias, res2d, apply_relu=relu,
                           out_dtype=jnp.bfloat16)
        return y.reshape(N, Ho, Wo, coutp)

    if kh == 3 and kw == 3 and stride == 1 and pad == 1 and H * W >= 8 and w.ndim == 3:
        assert residual is None
        return _conv3x3_direct(x, w, bias, relu)

    # Fallback: im2col GEMM (conv1 7x7 s2 and the strided 3x3 convs).
    # TODO(synk): strided direct conv (parity-split tap windows) not implemented.
    patches, Ho, Wo = _im2col(x, kh, kw, stride, pad)
    wk = w.reshape(-1, coutp) if w.ndim == 3 else w
    res2d = (residual.reshape(N * Ho * Wo, coutp)
             if residual is not None else None)
    y = _matmul_pallas(patches, wk, bias, res2d, apply_relu=relu,
                       out_dtype=jnp.bfloat16)
    return y.reshape(N, Ho, Wo, coutp)


def maxpool3x3s2(x):
    """MaxPool2d(kernel=3, stride=2, padding=1) on NHWC via a gridded Pallas kernel."""
    N, H, W, C = x.shape
    Ho = (H - 1) // 2 + 1
    Wo = (W - 1) // 2 + 1
    # pad with -inf so that padded extents are exactly 2*(Ho+1) x 2*(Wo+1)
    ph = 2 * Ho + 2 - 1 - H
    pw = 2 * Wo + 2 - 1 - W
    xp = jnp.pad(x, ((0, 0), (1, ph), (1, pw), (0, 0)), constant_values=-jnp.inf)
    xr = xp.reshape(N, Ho + 1, 2, Wo + 1, 2, C)
    ee = xr[:, :, 0, :, 0, :]
    eo = xr[:, :, 0, :, 1, :]
    oe = xr[:, :, 1, :, 0, :]
    oo = xr[:, :, 1, :, 1, :]

    tap_spec = pl.BlockSpec((1, Ho + 1, Wo + 1, C), lambda n: (n, 0, 0, 0))
    out = pl.pallas_call(
        _maxpool_kernel,
        out_shape=jax.ShapeDtypeStruct((N, Ho, Wo, C), x.dtype),
        grid_spec=pltpu.PrefetchScalarGridSpec(
            num_scalar_prefetch=0,
            grid=(N,),
            in_specs=[tap_spec, tap_spec, tap_spec, tap_spec],
            out_specs=pl.BlockSpec((1, Ho, Wo, C), lambda n: (n, 0, 0, 0)),
        ),
        compiler_params=pltpu.CompilerParams(
            dimension_semantics=("parallel",),
            vmem_limit_bytes=VMEM_LIMIT),
    )(ee, eo, oe, oo)
    return out


def gap_fc(x, w, bias, num_classes):
    """Fused AdaptiveAvgPool2d((1,1)) + flatten + Linear (Dropout is eval identity)."""
    N, H, W, C = x.shape
    HW = H * W
    Mp = _round_up(max(N, 16), 16)
    x3 = x.reshape(N, HW, C).astype(jnp.bfloat16)
    if Mp != N:
        x3 = jnp.pad(x3, ((0, Mp - N), (0, 0), (0, 0)))
    Np = w.shape[1]
    out = pl.pallas_call(
        _gap_fc_kernel,
        out_shape=jax.ShapeDtypeStruct((Mp, Np), jnp.float32),
        grid_spec=pltpu.PrefetchScalarGridSpec(
            num_scalar_prefetch=0,
            grid=(1,),
            in_specs=[pl.BlockSpec((Mp, HW, C), lambda i: (0, 0, 0)),
                      pl.BlockSpec((C, Np), lambda i: (0, 0)),
                      pl.BlockSpec((1, Np), lambda i: (0, 0))],
            out_specs=pl.BlockSpec((Mp, Np), lambda i: (0, 0)),
        ),
        compiler_params=pltpu.CompilerParams(
            dimension_semantics=("arbitrary",),
            vmem_limit_bytes=VMEM_LIMIT),
    )(x3, w.astype(jnp.bfloat16), bias.astype(jnp.float32))
    return out[:N, :num_classes]


# ----------------------------------------------------------------------------
# Parameters (deterministic; BN folded; weights pre-cast to bf16, pre-padded)
# ----------------------------------------------------------------------------
def _pad_weight(w_f32, b_f32):
    """(K, N) f32 weight + (N,) f32 bias -> bf16 (Kp, Np) weight, f32 (1, Np) bias."""
    K, N = w_f32.shape
    Kp, Np = _round_up(K, 128), _round_up(N, 128)
    w_p = jnp.zeros((Kp, Np), jnp.bfloat16).at[:K, :N].set(w_f32.astype(jnp.bfloat16))
    b_p = jnp.zeros((1, Np), jnp.float32).at[0, :N].set(b_f32.astype(jnp.float32))
    return w_p, b_p


def make_conv_bn(key, kh, kw, cin, cout, per_tap=True):
    kw_, kg, kb, km, kv = jax.random.split(key, 5)
    fan_in = kh * kw * cin
    w = jax.random.normal(kw_, (fan_in, cout), jnp.float32) * jnp.sqrt(2.0 / fan_in)
    gamma = 1.0 + 0.1 * jax.random.normal(kg, (cout,), jnp.float32)
    beta = 0.1 * jax.random.normal(kb, (cout,), jnp.float32)
    mean = 0.1 * jax.random.normal(km, (cout,), jnp.float32)
    var = jax.random.uniform(kv, (cout,), jnp.float32, 0.5, 1.5)
    s = gamma / jnp.sqrt(var + BN_EPS)
    w_f = w * s[None, :]
    b_f = beta - mean * s
    if per_tap:
        # per-tap channel padding: (taps, cin->128k, cout->128k) so the weight
        # layout matches channel-padded activations (and the direct-conv kernel).
        T = kh * kw
        cinp, coutp = _round_up(cin, 128), _round_up(cout, 128)
        w3 = w_f.reshape(T, cin, cout).astype(jnp.bfloat16)
        w_p = jnp.zeros((T, cinp, coutp), jnp.bfloat16).at[:, :cin, :cout].set(w3)
        b_p = jnp.zeros((1, coutp), jnp.float32).at[0, :cout].set(b_f)
        return {"w": w_p, "b": b_p}
    w_p, b_p = _pad_weight(w_f, b_f)
    return {"w": w_p, "b": b_p}


def make_bottleneck(key, cin, width, cout, stride):
    k1, k2, k3, kd = jax.random.split(key, 4)
    p = {
        "c1": make_conv_bn(k1, 1, 1, cin, width),
        "c2": make_conv_bn(k2, 3, 3, width, width),
        "c3": make_conv_bn(k3, 1, 1, width, cout),
    }
    if stride != 1 or cin != cout:
        p["ds"] = make_conv_bn(kd, 1, 1, cin, cout)
    return p


def build_params(key, num_classes):
    ks = list(jax.random.split(key, 256))
    idx = [0]

    def nk():
        k = ks[idx[0]]
        idx[0] += 1
        return k

    # conv1 keeps a flat-K padded 2-D weight (cin=3 must not be padded per tap).
    params = {"conv1": make_conv_bn(nk(), 7, 7, 3, 64, per_tap=False)}
    layers = []
    cin = 64
    for width, blocks, stride in STAGE_CFG:
        cout = width * EXPANSION
        blist = []
        for b in range(blocks):
            s = stride if b == 0 else 1
            blist.append(make_bottleneck(nk(), cin, width, cout, s))
            cin = cout
        layers.append(blist)
    params["layers"] = layers

    kfc1, kfc2 = jax.random.split(nk())
    w_fc = jax.random.normal(kfc1, (512 * EXPANSION, num_classes), jnp.float32) \
           * jnp.sqrt(1.0 / (512 * EXPANSION))
    b_fc = 0.01 * jax.random.normal(kfc2, (num_classes,), jnp.float32)
    w_p, b_p = _pad_weight(w_fc, b_fc)
    params["fc"] = {"w": w_p, "b": b_p}
    return params


# ----------------------------------------------------------------------------
# Forward pass (torchvision resnet50 structure, eval semantics)
# ----------------------------------------------------------------------------
def bottleneck_forward(x, p, stride):
    h = conv_bn(x, p["c1"]["w"], p["c1"]["b"],
                kh=1, kw=1, stride=1, pad=0, relu=True)
    h = conv_bn(h, p["c2"]["w"], p["c2"]["b"],
                kh=3, kw=3, stride=stride, pad=1, relu=True)
    if "ds" in p:
        identity = conv_bn(x, p["ds"]["w"], p["ds"]["b"],
                           kh=1, kw=1, stride=stride, pad=0, relu=False)
    else:
        identity = x
    # conv3 + BN3 + residual add + ReLU fused into one Pallas GEMM epilogue.
    return conv_bn(h, p["c3"]["w"], p["c3"]["b"], identity,
                   kh=1, kw=1, stride=1, pad=0, relu=True)


@jax.jit
def resnet_v1_forward(x_nchw, params):
    # layout: NCHW in (PyTorch convention) -> NHWC (bf16) internally.
    h = jnp.transpose(x_nchw, (0, 2, 3, 1)).astype(jnp.bfloat16)
    h = conv_bn(h, params["conv1"]["w"], params["conv1"]["b"],
                kh=7, kw=7, stride=2, pad=3, relu=True)
    h = maxpool3x3s2(h)
    for (width, blocks, stride), blist in zip(STAGE_CFG, params["layers"]):
        for bi, bp in enumerate(blist):
            s = stride if bi == 0 else 1
            h = bottleneck_forward(h, bp, s)
    # nn.Dropout(p=DROP_RATE) is identity in eval mode.
    # TODO(synk): training-mode stochastic dropout masking not implemented.
    logits = gap_fc(h, params["fc"]["w"], params["fc"]["b"], NUM_CLASSES)
    return logits


# ----------------------------------------------------------------------------
if __name__ == "__main__":
    key = jax.random.PRNGKey(0)
    kp, kx, ka, kb2, kc, kc1, kc2, kc3 = jax.random.split(key, 8)

    # --- GEMM-kernel sanity check (bf16 operands, f32 accumulate) -----------
    a = jax.random.normal(ka, (8, 32), jnp.float32)
    w = jax.random.normal(kb2, (32, 16), jnp.float32)
    bias = jnp.arange(16, dtype=jnp.float32) * 0.1
    w_p, b_p = _pad_weight(w, bias)
    got = _matmul_pallas(a, w_p, b_p, None, apply_relu=False,
                         out_dtype=jnp.float32)
    want = (a.astype(jnp.bfloat16).astype(jnp.float32)
            @ w.astype(jnp.bfloat16).astype(jnp.float32)) + bias[None, :]
    assert jnp.allclose(got[:, :16], want, atol=1e-2, rtol=1e-2), "GEMM mismatch"

    # --- direct 3x3 conv kernel sanity check ---------------------------------
    xc = jax.random.normal(kc1, (2, 8, 8, 128), jnp.float32)
    wc = jax.random.normal(kc2, (9, 128, 128), jnp.float32) * 0.04
    bc = 0.1 * jax.random.normal(kc3, (128,), jnp.float32)
    conv_got = _conv3x3_direct(xc.astype(jnp.bfloat16), wc.astype(jnp.bfloat16),
                               bc.reshape(1, 128), False).astype(jnp.float32)
    conv_ref = lax.conv_general_dilated(
        xc.astype(jnp.bfloat16).astype(jnp.float32),
        wc.astype(jnp.bfloat16).astype(jnp.float32).reshape(3, 3, 128, 128),
        window_strides=(1, 1), padding="SAME",
        dimension_numbers=("NHWC", "HWIO", "NHWC")) + bc[None, None, None, :]
    assert jnp.allclose(conv_got, conv_ref, atol=3e-2, rtol=3e-2), "conv3x3 mismatch"

    # --- MaxPool-kernel sanity check ----------------------------------------
    xm = jax.random.normal(kc, (2, 16, 16, 128), jnp.bfloat16)
    mp_got = maxpool3x3s2(xm).astype(jnp.float32)
    mp_ref = lax.reduce_window(xm.astype(jnp.float32), -jnp.inf, lax.max,
                               (1, 3, 3, 1), (1, 2, 2, 1),
                               ((0, 0), (1, 1), (1, 1), (0, 0)))
    assert jnp.allclose(mp_got, mp_ref), "MaxPool kernel mismatch"

    # --- Full ResNet-50 forward ----------------------------------------------
    params = build_params(kp, NUM_CLASSES)
    x = jax.random.normal(kx, (2, 3, 64, 64), jnp.float32)   # NCHW, like PyTorch

    # padded channels (64 real -> 128 stored) must stay exactly zero
    h1 = conv_bn(jnp.transpose(x, (0, 2, 3, 1)).astype(jnp.bfloat16),
                 params["conv1"]["w"], params["conv1"]["b"],
                 kh=7, kw=7, stride=2, pad=3, relu=True)
    assert bool(jnp.all(h1[..., 64:] == 0)), "padded channels not zero"

    logits = resnet_v1_forward(x, params)
    logits = jax.block_until_ready(logits)

    assert logits.shape == (2, NUM_CLASSES), logits.shape
    assert bool(jnp.all(jnp.isfinite(logits)))
    print("KERNEL_OK")
</pallas_src>

<mosaic_0001>
module attributes {stable_mosaic.version = 11 : i64} {
  func.func @_mm_kernel_single(%arg0: i32, %arg1: i32, %arg2: i32, %arg3: memref<16x128xbf16, #tpu.memory_space<vmem>>, %arg4: memref<128x128xbf16, #tpu.memory_space<vmem>>, %arg5: memref<1x128xf32, #tpu.memory_space<vmem>>, %arg6: memref<16x128xf32, #tpu.memory_space<vmem>>) attributes {dimension_semantics = [#tpu.dimension_semantics<parallel>, #tpu.dimension_semantics<parallel>, #tpu.dimension_semantics<arbitrary>], iteration_bounds = array<i64: 1, 1, 1>, scalar_prefetch = 0 : i64, scratch_operands = 0 : i64, tpu.core_type = #tpu.core_type<tc>, window_params = [{transform_indices = @transform_0, window_bounds = array<i64: 16, 128>}, {transform_indices = @transform_1, window_bounds = array<i64: 128, 128>}, {transform_indices = @transform_2, window_bounds = array<i64: 1, 128>}, {transform_indices = @transform_3, window_bounds = array<i64: 16, 128>}]} {
    %c0 = arith.constant 0 : index
    %c0_0 = arith.constant 0 : index
    %0 = vector.load %arg3[%c0, %c0_0] : memref<16x128xbf16, #tpu.memory_space<vmem>>, vector<16x128xbf16>
    %c0_1 = arith.constant 0 : index
    %c0_2 = arith.constant 0 : index
    %1 = vector.load %arg4[%c0_1, %c0_2] : memref<128x128xbf16, #tpu.memory_space<vmem>>, vector<128x128xbf16>
    %cst = arith.constant dense<0.000000e+00> : vector<16x128xf32>
    %2 = tpu.matmul %0, %1, %cst {dimension_numbers = #tpu.dot_dimension_numbers<[1], [0], [0], [1], [0, 0, 1, 1], [], []>} : vector<16x128xbf16>, vector<128x128xbf16>, vector<16x128xf32> -> vector<16x128xf32>
    %c0_3 = arith.constant 0 : index
    %c0_4 = arith.constant 0 : index
    %3 = vector.load %arg5[%c0_3, %c0_4] : memref<1x128xf32, #tpu.memory_space<vmem>>, vector<1x128xf32>
    %4 = vector.broadcast %3 : vector<1x128xf32> to vector<16x128xf32>
    %5 = arith.addf %2, %4 : vector<16x128xf32>
    %c0_5 = arith.constant 0 : index
    %c0_6 = arith.constant 0 : index
    %6 = vector.load %arg6[%c0_5, %c0_6] : memref<16x128xf32, #tpu.memory_space<vmem>>, vector<16x128xf32>
    tpu.vector_store %arg6[%c0_5, %c0_6], %5 {strides = array<i32>} : memref<16x128xf32, #tpu.memory_space<vmem>>, vector<16x128xf32>,
    return
  }
  func.func @transform_0(%arg0: i32, %arg1: i32, %arg2: i32) -> (i32, i32) {
    %c0_i32 = arith.constant 0 : i32
    return %arg0, %arg2 : i32, i32
  }
  func.func @transform_1(%arg0: i32, %arg1: i32, %arg2: i32) -> (i32, i32) {
    %c0_i32 = arith.constant 0 : i32
    return %arg2, %arg1 : i32, i32
  }
  func.func @transform_2(%arg0: i32, %arg1: i32, %arg2: i32) -> (i32, i32) {
    %c0_i32 = arith.constant 0 : i32
    %c0_i32_0 = arith.constant 0 : i32
    return %c0_i32, %arg1 : i32, i32
  }
  func.func @transform_3(%arg0: i32, %arg1: i32, %arg2: i32) -> (i32, i32) {
    %c0_i32 = arith.constant 0 : i32
    return %arg0, %arg1 : i32, i32
  }
}

</mosaic_0001>

<bundles_post_ra>
// kernel: tpu_custom_call.1
= control target key start
LH: loop header
LB: loop body
LE: loop exit
PB: predicated region body
PF: predicated region fallthrough
CT: control target
= control target key end

     0   :  { %8 = vsyncpa [#allocation3], 0  ;;  %s348_s0 = inlined_call_operand.hbm [shape: bf16[16,128], index: 0, kind: input, shape index: {}]   ;;  %s349_s1 = inlined_call_operand.hbm [shape: bf16[128,128], index: 1, kind: input, shape index: {}]   ;;  %s350_s2 = inlined_call_operand.vmem [shape: f32[1,128], index: 2, kind: input, shape index: {}]   ;;  %s351_s3 = inlined_call_operand.hbm [shape: f32[16,128], index: 3, kind: output, shape index: {}]  }
   0x1   :  { %9 = vsyncpa [#allocation6], 0 }
   0x2   :  { %10 = vsyncpa [#allocation4], 0  ;;  %s307_s12 = smov [#allocation2]  }
   0x3   :  { %s16_s13 = sshll.u32 %s307_s12, 4  ;;  %s17_s13 = int_to_ptr.vmem [resolvable:$true] %s16_s13 }
   0x4   :  { %s249_s14 = scalar_lea.vmem %s17_s13, 128  ;;  %p254_p1 = scmp.lt.s32.totalorder %s17_s13, %s17_s13 }
   0x5   :  { %p250_p0 = scmp.ne.s32.totalorder %s17_s13, %s249_s14  ;;  %p255_p2 = scmp.lt.s32.totalorder %s249_s14, %s249_s14 }
   0x7   :  { %p256_p3 = por %p255_p2, %p254_p1 }
   0x9   :  { %p257_p4 = pnand %p256_p3, %p250_p0 }
   0xb   :  { %260 = shalt.err (!%p257_p4)
}
   0xc   :  { %s308_s15 = smov 64   ;;  %s309_s16 = smov 4  }
   0xd   :  { %22 = dma.hbm_to_vmem [thread:$0]  %s348_s0, 128, %s17_s13, [#allocation3], %s308_s15, %s308_s15, %s309_s16  }
   0xe   :  { %s310_s19 = smov [#allocation5]  }
   0xf   :  { %s28_s20 = sshll.u32 %s310_s19, 4  ;;  %s29_s20 = int_to_ptr.vmem [resolvable:$true] %s28_s20 }
  0x10   :  { %s269_s21 = scalar_lea.vmem %s29_s20, 1024  ;;  %p274_p6 = scmp.lt.s32.totalorder %s29_s20, %s29_s20 }
  0x11   :  { %p270_p5 = scmp.ne.s32.totalorder %s29_s20, %s269_s21  ;;  %p275_p7 = scmp.lt.s32.totalorder %s269_s21, %s269_s21 }
  0x13   :  { %p276_p8 = por %p275_p7, %p274_p6 }
  0x15   :  { %p277_p9 = pnand %p276_p8, %p270_p5 }
  0x17   :  { %280 = shalt.err (!%p277_p9)
}
  0x18   :  { %34 = dma.hbm_to_vmem [thread:$0]  %s349_s1, 1024, %s29_s20, [#allocation6], %s308_s15, %s308_s15, %s309_s16  }
  0x19   :  { %301 = dma.done.wait [#allocation3], 128  }
  0x1a   :  { %302 = vsyncadd [#allocation3], 4294967168 }
  0x1b   :  { %303 = dma.done.wait [#allocation6], 1024  }
  0x1c   :  { %304 = vsyncadd [#allocation6], 4294966272  ;;  %v311_v0 = vmov 0.0   ;;  %vm312_vm0 = vmmov 0   ;;  %v232_v1 = vld [vmem:[#allocation5 + $0x38] sm:$0xff]   ;;  %v233_v2 = vld [vmem:[#allocation5 + $0x30] sm:$0xff]  }
  0x1d   :  { %203 = vmatprep.subr.bf16.mxu0 %v311_v0  ;;  %219 = vmatprep.mubr.msk.bf16.mxu0 %vm312_vm0, %v311_v0  ;;  %v234_v3 = vld [vmem:[#allocation5 + $0x28] sm:$0xff]   ;;  %v235_v4 = vld [vmem:[#allocation5 + $0x20] sm:$0xff]   ;;  %v236_v5 = vld [vmem:[#allocation5 + $0x18] sm:$0xff]   ;;  %s313_s24 = smov [#allocation7]  }
  0x1e   :  { %204 = vmatpush3.bf16.msra.mxu0 %v232_v1  ;;  %v237_v6 = vld [vmem:[#allocation5 + $0x10] sm:$0xff]   ;;  %v238_v7 = vld [vmem:[#allocation5 + $0x8] sm:$0xff]   ;;  %v239_v8 = vld [vmem:[#allocation5] sm:$0xff]   ;;  %s171_s25 = sshll.u32 %s313_s24, 4  ;;  %s172_s25 = int_to_ptr.vmem [resolvable:$true] %s171_s25 }
  0x1f   :  { %205 = vmatprep.subr.bf16.mxu0 %v311_v0  ;;  %v240_v9 = vld [vmem:[#allocation2] sm:$0xff]   ;;  %s281_s26 = scalar_lea.vmem %s172_s25, 256  ;;  %p286_p11 = scmp.lt.s32.totalorder %s172_s25, %s172_s25 }
  0x20   :  { %v184_v10 = vld [vmem:[%s350_s2] ss:$0 sm:$0xff]  ;;  %p282_p10 = scmp.ne.s32.totalorder %s172_s25, %s281_s26  ;;  %p287_p12 = scmp.lt.s32.totalorder %s281_s26, %s281_s26 }
  0x22   :  { %206 = vmatpush3.bf16.msra.mxu0 %v233_v2  ;;  %p288_p13 = por %p287_p12, %p286_p11 }
  0x23   :  { %207 = vmatprep.subr.bf16.mxu0 %v311_v0 }
  0x24   :  { %p289_p0 = pnand %p288_p13, %p282_p10 }
  0x26   :  { %208 = vmatpush3.bf16.msra.mxu0 %v234_v3 }
  0x27   :  { %209 = vmatprep.subr.bf16.mxu0 %v311_v0 }
  0x2a   :  { %210 = vmatpush3.bf16.msra.mxu0 %v235_v4 }
  0x2b   :  { %211 = vmatprep.subr.bf16.mxu0 %v311_v0 }
  0x2e   :  { %212 = vmatpush3.bf16.msra.mxu0 %v236_v5 }
  0x2f   :  { %213 = vmatprep.subr.bf16.mxu0 %v311_v0 }
  0x32   :  { %214 = vmatpush3.bf16.msra.mxu0 %v237_v6 }
  0x33   :  { %215 = vmatprep.subr.bf16.mxu0 %v311_v0 }
  0x36   :  { %216 = vmatpush3.bf16.msra.mxu0 %v238_v7 }
  0x37   :  { %217 = vmatprep.subr.bf16.mxu0 %v311_v0 }
  0x3a   :  { %218 = vmatpush3.bf16.msra.mxu0 %v239_v8 }
  0x3d   :  { %220 = vmatmul.mubr.bf16.vlgmr.msra.gmra.mxu0 %v240_v9 }
  0xfd   :  { %v157_v11 = vpop.f32.mrf.mxu0 }
  0xfe   :  { %v158_v12 = vadd.f32 %v184_v10, %v157_v11 }
  0xff   :  { %v221_v13 = vpop.f32.mrf.mxu0 }
 0x100   :  { %164 = vst [vmem:[#allocation7] sm:$0xff] %v158_v12 }
 0x101   :  { %v160_v14 = vpop.f32.mrf.mxu0 }
 0x102   :  { %v161_v15 = vadd.f32 %v184_v10, %v160_v14 }
 0x103   :  { %v222_v16 = vpop.f32.mrf.mxu0 }
 0x104   :  { %165 = vst [vmem:[#allocation7 + $0x8] sm:$0xff] %v161_v15 }
 0x105   :  { %292 = shalt.err (!%p289_p0)
}
 0x106   :  { %s314_s27 = smov 128   ;;  %s315_s2 = smov 8  }
 0x107   :  { %177 = dma.vmem_to_hbm [thread:$0]  %s172_s25, 256, %s351_s3, [#allocation4], %s314_s27, %s314_s27, %s315_s2  }
 0x108   :  { %305 = dma.done.wait [#allocation4], 256  }
 0x109   :  { %306 = vsyncadd [#allocation4], 4294967040 }
 0x10a   :  { %181 = vsyncpa [#allocation3], 1 }
 0x10b   :  { %182 = vsyncpa [#allocation6], 1 }
 0x10c   :  { %183 = vsyncpa [#allocation4], 1 }

</bundles_post_ra>
